<compile_context>
chip_gen: v6e
topology: v6e:2x2x1
jax: 0.10.0
libtpu: 0.0.40
codegen_flags: <defaults>
</compile_context>

<pallas_src>
import jax
import jax.numpy as jnp
from jax.experimental import pallas as pl
from jax.experimental.pallas import tpu as pltpu


def _identity_kernel(w_ref, o_ref):
    # Forward of Fn.apply(x) is exactly x.
    o_ref[...] = w_ref[...]


def _identity_pallas(weight: jax.Array) -> jax.Array:
    # Gridless whole-array call: one tile, no software-pipelining scaffolding.
    # The (2, 2) sub-vreg tile is fine at this size (full-extent block, no (8,128)
    # divisibility requirement); aliasing removes the output allocation.
    return pl.pallas_call(
        _identity_kernel,
        out_shape=jax.ShapeDtypeStruct(weight.shape, weight.dtype),
        in_specs=[pl.BlockSpec(memory_space=pltpu.MemorySpace.VMEM)],
        out_specs=pl.BlockSpec(memory_space=pltpu.MemorySpace.VMEM),
        input_output_aliases={0: 0},
    )(weight)


# Match the PyTorch autograd.Function semantics: forward is identity, backward
# returns full_like(x, 0.5) regardless of the incoming cotangent.
@jax.custom_vjp
def fn_apply(x: jax.Array) -> jax.Array:
    return _identity_pallas(x)


def _fn_fwd(x):
    return _identity_pallas(x), x


def _fn_bwd(x, g):
    del g  # PyTorch backward ignores grad_output and returns a constant 0.5 grad.
    return (jnp.full_like(x, 0.5),)


fn_apply.defvjp(_fn_fwd, _fn_bwd)


def model_forward(weight: jax.Array) -> jax.Array:
    """Pallas equivalent of Model.forward(): returns the weight unchanged."""
    return fn_apply(weight)


if __name__ == "__main__":
    # Deterministic parameter init mirroring torch.full((2, 2), 10.0).
    # (PRNGKey kept for interface consistency; the parameter itself is constant.)
    _ = jax.random.PRNGKey(0)
    weight = jnp.full((2, 2), 10.0, dtype=jnp.float32)

    out = model_forward(weight)
    out = jax.block_until_ready(out)

    expected = jnp.full((2, 2), 10.0, dtype=jnp.float32)
    assert out.shape == (2, 2)
    assert out.dtype == jnp.float32
    assert bool(jnp.all(out == expected))

    # Backward check: grad should be constant 0.5 (matching the PyTorch Fn.backward).
    grads = jax.grad(lambda w: jnp.sum(model_forward(w)))(weight)
    grads = jax.block_until_ready(grads)
    assert bool(jnp.all(grads == jnp.full((2, 2), 0.5, dtype=jnp.float32)))

    print("KERNEL_OK")
</pallas_src>

<mosaic_0001>
module attributes {stable_mosaic.version = 11 : i64} {
  func.func @_identity_kernel(%arg0: memref<2x2xf32, #tpu.memory_space<vmem>>, %arg1: memref<2x2xf32, #tpu.memory_space<vmem>>) attributes {dimension_semantics = [], scalar_prefetch = 0 : i64, scratch_operands = 0 : i64, tpu.core_type = #tpu.core_type<tc>} {
    %c0 = arith.constant 0 : index
    %c0_0 = arith.constant 0 : index
    %0 = vector.load %arg0[%c0, %c0_0] : memref<2x2xf32, #tpu.memory_space<vmem>>, vector<2x2xf32>
    %c0_1 = arith.constant 0 : index
    %c0_2 = arith.constant 0 : index
    %1 = vector.load %arg1[%c0_1, %c0_2] : memref<2x2xf32, #tpu.memory_space<vmem>>, vector<2x2xf32>
    tpu.vector_store %arg1[%c0_1, %c0_2], %0 {strides = array<i32>} : memref<2x2xf32, #tpu.memory_space<vmem>>, vector<2x2xf32>,
    return
  }
}

</mosaic_0001>

<bundles_post_ra>
// kernel: tpu_custom_call.1
= control target key start
LH: loop header
LB: loop body
LE: loop exit
PB: predicated region body
PF: predicated region fallthrough
CT: control target
= control target key end

     0   :  { %6 = vsyncpa [#allocation3], 0  ;;  %s103_s0 = inlined_call_operand.hbm [shape: f32[2,2], index: 0, kind: input, shape index: {}, may-alias: {0,1}]   ;;  %s104_s1 = inlined_call_operand.hbm [shape: f32[2,2], index: 1, kind: output, shape index: {}, may-alias: {0,1}]  }
   0x1   :  { %7 = vsyncpa [#allocation4], 0  ;;  %s85_s6 = smov [#allocation2]  }
   0x2   :  { %s14_s7 = sshll.u32 %s85_s6, 4  ;;  %s15_s7 = int_to_ptr.vmem [resolvable:$true] %s14_s7 }
   0x3   :  { %s49_s8 = scalar_lea.vmem %s15_s7, 32  ;;  %p54_p1 = scmp.lt.s32.totalorder %s15_s7, %s15_s7 }
   0x4   :  { %p50_p0 = scmp.ne.s32.totalorder %s15_s7, %s49_s8  ;;  %p55_p2 = scmp.lt.s32.totalorder %s49_s8, %s49_s8 }
   0x6   :  { %p56_p3 = por %p55_p2, %p54_p1 }
   0x8   :  { %p57_p4 = pnand %p56_p3, %p50_p0 }
   0xa   :  { %60 = shalt.err (!%p57_p4)
}
   0xb   :  { %17 = dma.hbm_to_vmem [thread:$0]  %s103_s0, 32, %s15_s7, [#allocation3]  }
   0xc   :  { %81 = dma.done.wait [#allocation3], 32  }
   0xd   :  { %82 = vsyncadd [#allocation3], 4294967264  ;;  %s86_s11 = smov [#allocation5]   ;;  %vm22_vm0 = vcmask 9216   ;;  %v21_v0 = vld [vmem:[#allocation2] sm:$0x3] }
   0xe   :  { %s30_s12 = sshll.u32 %s86_s11, 4  ;;  %23 = vst.msk [vmem:[#allocation5] sm:$0x3] %vm22_vm0, %v21_v0  ;;  %s31_s12 = int_to_ptr.vmem [resolvable:$true] %s30_s12 }
   0xf   :  { %s61_s13 = scalar_lea.vmem %s31_s12, 32  ;;  %p66_p6 = scmp.lt.s32.totalorder %s31_s12, %s31_s12 }
  0x10   :  { %p62_p5 = scmp.ne.s32.totalorder %s31_s12, %s61_s13  ;;  %p67_p7 = scmp.lt.s32.totalorder %s61_s13, %s61_s13 }
  0x12   :  { %p68_p8 = por %p67_p7, %p66_p6 }
  0x14   :  { %p69_p9 = pnand %p68_p8, %p62_p5 }
  0x16   :  { %72 = shalt.err (!%p69_p9)
}
  0x17   :  { %33 = dma.vmem_to_hbm [thread:$0]  %s31_s12, 32, %s104_s1, [#allocation4]  }
  0x18   :  { %83 = dma.done.wait [#allocation4], 32  }
  0x19   :  { %84 = vsyncadd [#allocation4], 4294967264 }
  0x1a   :  { %37 = vsyncpa [#allocation3], 1 }
  0x1b   :  { %38 = vsyncpa [#allocation4], 1 }

</bundles_post_ra>
